<compile_context>
chip_gen: v5e
topology: v5e:2x2
jax: 0.10.0
libtpu: 0.0.40
codegen_flags: <defaults>
</compile_context>

<pallas_src>
import functools

import jax
import jax.numpy as jnp
from jax.experimental import pallas as pl
from jax.experimental.pallas import tpu as pltpu


def _round_up(x, n):
    return ((x + n - 1) // n) * n


def am_softmax_kernel(x_ref, w_ref, lab_ref, out_ref, inv_norm_ref, *, m, s, block_n):
    j = pl.program_id(0)   # class tile (outer, "parallel")
    i = pl.program_id(1)   # batch tile (inner, "arbitrary")

    # Per-column inverse L2 norm of this weight tile: compute once per class
    # tile (first batch tile) and cache it in VMEM scratch.
    @pl.when(i == 0)
    def _():
        w_f32 = w_ref[...].astype(jnp.float32)
        sumsq = jnp.sum(w_f32 * w_f32, axis=0, keepdims=True)       # (1, TN)
        inv_norm_ref[...] = jax.lax.rsqrt(jnp.maximum(sumsq, 1e-12))  # zero-col guard

    # MXU matmul in native operand dtype, f32 accumulation; normalize after
    # (scaling commutes with the contraction).
    raw = jnp.dot(x_ref[...], w_ref[...], preferred_element_type=jnp.float32)
    cos_theta = jnp.clip(raw * inv_norm_ref[...], -1.0, 1.0)

    # One-hot(label) select with the class-tile offset folded in.
    col_ids = jax.lax.broadcasted_iota(jnp.int32, cos_theta.shape, 1) + j * block_n
    one_hot = col_ids == lab_ref[...]                                # (TM,1) broadcast

    scaled = cos_theta * s
    out = jnp.where(one_hot, scaled - s * m, scaled)
    out_ref[...] = out.astype(out_ref.dtype)


def am_softmax_forward(embeddings, kernel, label, *, m=0.35, s=30.0,
                       block_b=128, block_n=1024,
                       stream_weights_bf16=False, out_dtype=jnp.float32):
    """embeddings: [B, in_features], kernel: [in_features, out_features],
    label: [B] int. Returns [B, out_features] in `out_dtype`."""
    B, K = embeddings.shape
    K2, N = kernel.shape
    assert K == K2, "embedding dim mismatch"

    if stream_weights_bf16:
        # Halves dominant HBM traffic; inv_norm & accumulation stay f32.
        kernel = kernel.astype(jnp.bfloat16)

    x_itemsize = jnp.dtype(embeddings.dtype).itemsize
    w_itemsize = jnp.dtype(kernel.dtype).itemsize
    o_itemsize = jnp.dtype(out_dtype).itemsize

    # Sublane granularity: bf16 packs 2 rows/sublane -> use 16.
    sub = 16 if x_itemsize == 2 else 8

    # Tile sizes: batch tiles multiple of `sub` sublanes, class tiles multiple
    # of 128 lanes (lane-dense output -> unmasked vst).
    tm = min(block_b, _round_up(B, sub))
    tn = min(block_n, _round_up(N, 128))
    # Cap tn so double-buffered weight tiles stay <= ~24 MiB (v7x headroom).
    while 2 * K * tn * w_itemsize > (24 << 20) and tn > 128:
        tn //= 2
    tn = max(128, _round_up(tn, 128))

    Bp = _round_up(B, tm)
    Np = _round_up(N, tn)

    x = embeddings if Bp == B else jnp.pad(embeddings, ((0, Bp - B), (0, 0)))
    w = kernel if Np == N else jnp.pad(kernel, ((0, 0), (0, Np - N)))
    lab = label.reshape(-1).astype(jnp.int32)
    if Bp != B:
        lab = jnp.pad(lab, (0, Bp - B), constant_values=-1)  # never matches a column
    lab2d = lab.reshape(Bp, 1)

    # Class axis OUTER (weight tile DMA'd once), batch axis INNER.
    grid = (Np // tn, Bp // tm)
    kern = functools.partial(am_softmax_kernel, m=m, s=s, block_n=tn)

    # VMEM limit from actual double-buffered footprint (+ scratch + margin),
    # capped for v7x's 64 MiB/TC.
    per_step = tm * K * x_itemsize + K * tn * w_itemsize + tm * 4 + tm * tn * o_itemsize
    vmem_limit = int(min(max(2 * per_step + tn * 4 + (8 << 20), 32 << 20), 64 << 20))

    cost = pl.CostEstimate(
        flops=2 * Bp * K * Np,
        transcendentals=0,
        bytes_accessed=K * Np * w_itemsize
        + Bp * K * x_itemsize * (Np // tn)
        + Bp * Np * o_itemsize
        + Bp * 4,
    )

    out = pl.pallas_call(
        kern,
        out_shape=jax.ShapeDtypeStruct((Bp, Np), out_dtype),
        grid_spec=pltpu.PrefetchScalarGridSpec(
            num_scalar_prefetch=0,
            grid=grid,
            in_specs=[
                # x tile: varies only with the (fast) batch axis; small.
                pl.BlockSpec((tm, K), lambda j, i: (i, 0)),
                # weight tile: constant across the fast axis -> DMA'd once per
                # class tile (dominant traffic read exactly once overall).
                pl.BlockSpec((K, tn), lambda j, i: (0, j)),
                # labels for this batch tile.
                pl.BlockSpec((tm, 1), lambda j, i: (i, 0)),
            ],
            out_specs=pl.BlockSpec((tm, tn), lambda j, i: (i, j)),
            scratch_shapes=[pltpu.VMEM((1, tn), jnp.float32)],  # cached inv_norm
        ),
        compiler_params=pltpu.CompilerParams(
            # Class axis parallel (megacore split over class tiles); batch axis
            # arbitrary so the inv_norm init at i==0 always runs on each core.
            dimension_semantics=("parallel", "arbitrary"),
            vmem_limit_bytes=vmem_limit,
        ),
        cost_estimate=cost,
    )(x, w, lab2d)

    if Bp != B or Np != N:
        out = out[:B, :N]
    return out


def init_am_softmax_kernel(key, in_features, out_features):
    """Mimic the PyTorch init: uniform(-1, 1), renorm_(2, dim=1, 1e-5), mul_(1e5).
    Net effect: each column has L2 norm ~1."""
    w = jax.random.uniform(key, (in_features, out_features),
                           dtype=jnp.float32, minval=-1.0, maxval=1.0)
    col_norm = jnp.sqrt(jnp.sum(w * w, axis=0, keepdims=True))
    maxnorm = 1e-5
    scale = jnp.where(col_norm > maxnorm, maxnorm / col_norm, 1.0)
    return w * scale * 1e5


def reference_forward(embeddings, kernel, label, *, m=0.35, s=30.0):
    """Pure-JAX reference mirroring the PyTorch forward."""
    col_norm = jnp.sqrt(jnp.sum(kernel * kernel, axis=0, keepdims=True))
    w_norm = kernel / col_norm
    cos = jnp.clip(embeddings @ w_norm, -1.0, 1.0)
    phi = cos - m
    one_hot = jax.nn.one_hot(label, kernel.shape[1], dtype=jnp.bool_)
    return jnp.where(one_hot, phi, cos) * s


if __name__ == "__main__":
    B = 16
    in_features = 32
    out_features = 512   # multiple of 128 -> lane-dense class tiles
    m, s = 0.35, 30.0

    key = jax.random.PRNGKey(0)
    k_w, k_x, k_lab = jax.random.split(key, 3)

    kernel_w = init_am_softmax_kernel(k_w, in_features, out_features)
    embeddings = jax.random.normal(k_x, (B, in_features), dtype=jnp.float32)
    label = jax.random.randint(k_lab, (B,), 0, out_features, dtype=jnp.int32)

    # block_b=8, block_n=128 -> grid of (4 class tiles, 2 batch tiles) to
    # exercise the swapped grid order and the cached-inv_norm path (i > 0).
    out = am_softmax_forward(embeddings, kernel_w, label, m=m, s=s,
                             block_b=8, block_n=128)
    out = jax.block_until_ready(out)

    ref = reference_forward(embeddings, kernel_w, label, m=m, s=s)
    assert out.shape == (B, out_features)
    assert jnp.allclose(out, ref, atol=1e-3, rtol=1e-3), "mismatch vs reference"

    print("KERNEL_OK")
</pallas_src>

<mosaic_0001>
module attributes {stable_mosaic.version = 11 : i64} {
  func.func @am_softmax_kernel(%arg0: i32, %arg1: i32, %arg2: memref<8x32xf32, #tpu.memory_space<vmem>>, %arg3: memref<32x128xf32, #tpu.memory_space<vmem>>, %arg4: memref<8x1xi32, #tpu.memory_space<vmem>>, %arg5: memref<8x128xf32, #tpu.memory_space<vmem>>, %arg6: memref<1x128xf32, #tpu.memory_space<vmem>>) attributes {dimension_semantics = [#tpu.dimension_semantics<parallel>, #tpu.dimension_semantics<arbitrary>], iteration_bounds = array<i64: 4, 2>, scalar_prefetch = 0 : i64, scratch_operands = 1 : i64, tpu.core_type = #tpu.core_type<tc>, window_params = [{transform_indices = @transform_0, window_bounds = array<i64: 8, 32>}, {transform_indices = @transform_1, window_bounds = array<i64: 32, 128>}, {transform_indices = @transform_2, window_bounds = array<i64: 8, 1>}, {transform_indices = @transform_3, window_bounds = array<i64: 8, 128>}]} {
    %c0_i32 = arith.constant 0 : i32
    %0 = arith.cmpi eq, %arg1, %c0_i32 : i32
    %1 = arith.extui %0 : i1 to i32
    %c0_i32_0 = arith.constant 0 : i32
    %2 = arith.cmpi ne, %1, %c0_i32_0 : i32
    scf.if %2 {
      %c0_14 = arith.constant 0 : index
      %c0_15 = arith.constant 0 : index
      %26 = vector.load %arg3[%c0_14, %c0_15] : memref<32x128xf32, #tpu.memory_space<vmem>>, vector<32x128xf32>
      %27 = arith.mulf %26, %26 : vector<32x128xf32>
      %cst_16 = arith.constant dense<0.000000e+00> : vector<128xf32>
      %28 = vector.multi_reduction <add>, %27, %cst_16 [0] : vector<32x128xf32> to vector<128xf32>
      %29 = vector.shape_cast %28 : vector<128xf32> to vector<1x128xf32>
      %cst_17 = arith.constant 9.99999996E-13 : f32
      %30 = vector.broadcast %cst_17 : f32 to vector<1x128xf32>
      %31 = arith.maximumf %29, %30 : vector<1x128xf32>
      %32 = math.rsqrt %31 : vector<1x128xf32>
      %c0_18 = arith.constant 0 : index
      %c0_19 = arith.constant 0 : index
      %33 = vector.load %arg6[%c0_18, %c0_19] : memref<1x128xf32, #tpu.memory_space<vmem>>, vector<1x128xf32>
      tpu.vector_store %arg6[%c0_18, %c0_19], %32 {strides = array<i32>} : memref<1x128xf32, #tpu.memory_space<vmem>>, vector<1x128xf32>,
    } else {
    }
    %c0 = arith.constant 0 : index
    %c0_1 = arith.constant 0 : index
    %3 = vector.load %arg2[%c0, %c0_1] : memref<8x32xf32, #tpu.memory_space<vmem>>, vector<8x32xf32>
    %c0_2 = arith.constant 0 : index
    %c0_3 = arith.constant 0 : index
    %4 = vector.load %arg3[%c0_2, %c0_3] : memref<32x128xf32, #tpu.memory_space<vmem>>, vector<32x128xf32>
    %cst = arith.constant dense<0.000000e+00> : vector<8x128xf32>
    %5 = tpu.matmul %3, %4, %cst {dimension_numbers = #tpu.dot_dimension_numbers<[1], [0], [0], [1], [0, 0, 1, 1], [], []>} : vector<8x32xf32>, vector<32x128xf32>, vector<8x128xf32> -> vector<8x128xf32>
    %c0_4 = arith.constant 0 : index
    %c0_5 = arith.constant 0 : index
    %6 = vector.load %arg6[%c0_4, %c0_5] : memref<1x128xf32, #tpu.memory_space<vmem>>, vector<1x128xf32>
    %7 = vector.broadcast %6 : vector<1x128xf32> to vector<8x128xf32>
    %8 = arith.mulf %5, %7 : vector<8x128xf32>
    %cst_6 = arith.constant -1.000000e+00 : f32
    %cst_7 = arith.constant 1.000000e+00 : f32
    %9 = vector.broadcast %cst_6 : f32 to vector<8x128xf32>
    %10 = arith.maximumf %9, %8 : vector<8x128xf32>
    %11 = vector.broadcast %cst_7 : f32 to vector<8x128xf32>
    %12 = arith.minimumf %11, %10 : vector<8x128xf32>
    %13 = tpu.iota {dimensions = array<i32: 1>} : vector<8x128xi32>
    %c128_i32 = arith.constant 128 : i32
    %14 = arith.muli %arg0, %c128_i32 : i32
    %15 = vector.broadcast %14 : i32 to vector<8x128xi32>
    %16 = arith.addi %13, %15 : vector<8x128xi32>
    %c0_8 = arith.constant 0 : index
    %c0_9 = arith.constant 0 : index
    %17 = vector.load %arg4[%c0_8, %c0_9] : memref<8x1xi32, #tpu.memory_space<vmem>>, vector<8x1xi32>
    %18 = vector.broadcast %17 : vector<8x1xi32> to vector<8x128xi32>
    %19 = arith.cmpi eq, %16, %18 : vector<8x128xi32>
    %cst_10 = arith.constant 3.000000e+01 : f32
    %20 = vector.broadcast %cst_10 : f32 to vector<8x128xf32>
    %21 = arith.mulf %12, %20 : vector<8x128xf32>
    %cst_11 = arith.constant 1.050000e+01 : f32
    %22 = vector.broadcast %cst_11 : f32 to vector<8x128xf32>
    %23 = arith.subf %21, %22 : vector<8x128xf32>
    %24 = arith.select %19, %23, %21 : vector<8x128xi1>, vector<8x128xf32>
    %c0_12 = arith.constant 0 : index
    %c0_13 = arith.constant 0 : index
    %25 = vector.load %arg5[%c0_12, %c0_13] : memref<8x128xf32, #tpu.memory_space<vmem>>, vector<8x128xf32>
    tpu.vector_store %arg5[%c0_12, %c0_13], %24 {strides = array<i32>} : memref<8x128xf32, #tpu.memory_space<vmem>>, vector<8x128xf32>,
    return
  }
  func.func @transform_0(%arg0: i32, %arg1: i32) -> (i32, i32) {
    %c0_i32 = arith.constant 0 : i32
    %c0_i32_0 = arith.constant 0 : i32
    return %arg1, %c0_i32 : i32, i32
  }
  func.func @transform_1(%arg0: i32, %arg1: i32) -> (i32, i32) {
    %c0_i32 = arith.constant 0 : i32
    %c0_i32_0 = arith.constant 0 : i32
    return %c0_i32, %arg0 : i32, i32
  }
  func.func @transform_2(%arg0: i32, %arg1: i32) -> (i32, i32) {
    %c0_i32 = arith.constant 0 : i32
    %c0_i32_0 = arith.constant 0 : i32
    return %arg1, %c0_i32 : i32, i32
  }
  func.func @transform_3(%arg0: i32, %arg1: i32) -> (i32, i32) {
    %c0_i32 = arith.constant 0 : i32
    return %arg1, %arg0 : i32, i32
  }
}

</mosaic_0001>

<bundles_post_ra>
// kernel: tpu_custom_call.1
= control target key start
LH: loop header
LB: loop body
LE: loop exit
PB: predicated region body
PF: predicated region fallthrough
CT: control target
= control target key end

     0   :  { %8 = vsyncpa [#allocation4], 0  ;;  %s958_s0 = inlined_call_operand.vmem [shape: f32[16,32], index: 0, kind: input, shape index: {}]   ;;  %s959_s1 = inlined_call_operand.hbm [shape: f32[32,512], index: 1, kind: input, shape index: {}]   ;;  %s960_s2 = inlined_call_operand.vmem [shape: s32[16,1], index: 2, kind: input, shape index: {}]   ;;  %s961_s3 = inlined_call_operand.hbm [shape: f32[16,512], index: 3, kind: output, shape index: {}]  }
   0x1   :  { %10 = vsyncpa [#allocation4 + $0x1], 0 }
   0x2   :  { %11 = vsyncpa [#allocation5], 0 }
   0x3   :  { %13 = vsyncpa [#allocation5 + $0x1], 0  ;;  %s755_s12 = smov 0   ;;  %s757_s13 = smov 0  }
   0x4   :  { %s759_s14 = smov 0   ;;  %s761_s15 = smov 0  }
   0x5   :  { %s763_s16 = smov 0   ;;  %s765_s17 = smov 0  }
   0x6   :  { %s767_s18 = smov 0   ;;  %s769_s19 = smov 0  }
   0x7   :  { %s771_s20 = smov 0   ;;  %s773_s21 = smov 0  }
   0x8   :  { %s775_s22 = smov 0  }
   0x9 LB: > { %965 = sst [smem:[#allocation9_spill]] %s721_s20  ;;  %s446_s23 = sadd.s32 4294967295, %s729_s22   ;;  %s729_s22 = sphi %s775_s22, %s19_s22   ;;  %s725_s21 = sphi %s773_s21, %s984_s21   ;;  %s721_s20 = sphi %s771_s20, %s975_s20   ;;  %s717_s19 = sphi %s769_s19, %s983_s19   ;;  %s713_s18 = sphi %s767_s18, %s974_s18   ;;  %s709_s17 = sphi %s765_s17, %s982_s17   ;;  %s705_s16 = sphi %s763_s16, %s981_s16   ;;  %s701_s15 = sphi %s761_s15, %s980_s15   ;;  %s697_s14 = sphi %s759_s14, %s979_s14   ;;  %s693_s13 = sphi %s757_s13, %s978_s13   ;;  %s689_s12 = sphi %s755_s12, %s977_s12  }
   0xa   : > { %s447_s24 = sadd.s32 4294967294, %s729_s22   ;;  %s28_s25 = sadd.s32 1, %s721_s20 }
   0xb   : > { %s31_s26 = sadd.s32 1, %s725_s21  ;;  %p29_p0 = scmp.ge.s32.totalorder %s28_s25, 2 }
   0xc   : > { %s64_s27 = sadd.s32 1, %s709_s17  ;;  %p71_p1 = scmp.ne.s32.totalorder %s709_s17, %s705_s16 }
   0xd   : > { %p72_p2 = scmp.eq.s32.totalorder %s729_s22, 0  ;;  %s986_s25 = smov (%p29_p0, %s28_s25), 0 }
   0xe   : > { %966 = sst [smem:[#allocation10_spill]] %s986_s25  ;;  %s988_s26 = smov (!%p29_p0, %s31_s26), %s725_s21 }
   0xf   : > { %p819_p3 = por %p72_p2, %p71_p1  ;;  %p77_p4 = scmp.ne.s32.totalorder %s705_s16, %s701_s15 }
  0x10   : > { %p33_p5 = scmp.ge.s32.totalorder %s988_s26, 4  ;;  %p78_p6 = scmp.eq.s32.totalorder %s446_s23, 0 }
  0x11   : > { %s113_s29 = ssub.s32 %s721_s20, %s986_s25  ;;  %s118_s30 = sadd.s32 1, %s697_s14 }
  0x12   : > { %s990_s26 = smov (%p33_p5, %s988_s26), 0  ;;  %p829_p7 = por %p78_p6, %p77_p4 }
  0x13   : > { %968 = sst [smem:[#allocation11_spill]] %s990_s26  ;;  %p128_p8 = scmp.ne.s32.totalorder %s697_s14, %s693_s13 }
  0x14   : > { %s61_s5 = ssub.s32 %s725_s21, %s990_s26  ;;  %p129_p9 = scmp.eq.s32.totalorder %s446_s23, 7 }
  0x15   : > { %p62_p10 = scmp.eq.s32.totalorder %s61_s5, 0  ;;  %s115_s6 = sor.u32 %s113_s29, %s61_s5 }
  0x16   : > { %p116_p11 = scmp.eq.s32.totalorder %s115_s6, 0  ;;  %p837_p12 = por %p129_p9, %p128_p8 }
  0x17   : > { %s842_s8 = scalar_select %p62_p10, %s709_s17, %s64_s27  }
  0x18   : > { %s845_s9 = scalar_select %p116_p11, %s697_s14, %s118_s30  }
  0x19   : > { %971 = sst [smem:[#allocation12_spill]] %s842_s8  ;;  %p134_p13 = scmp.ne.s32.totalorder %s693_s13, %s689_s12 }
  0x1a   : > { %p135_p0 = scmp.eq.s32.totalorder %s447_s24, 7  ;;  %p479_p1 = scmp.lt.s32.totalorder %s729_s22, 8 }
  0x1b   : > { %s162_s11 = sand.u32 1, %s709_s17   ;;  %s451_s23 = sshll.u32 %s725_s21, 3 }
  0x1c   : > { %p850_p2 = por %p135_p0, %p134_p13  ;;  %s450_s15 = sshll.u32 %s162_s11, 5 }
  0x1d   : > { %s170_s6 = scalar_lea.hbm %s959_s1, %s451_s23  ;;  %s166_s27 = scalar_lea.vmem [#allocation3], %s450_s15 }
  0x1e   : > { %s173_s26 = sshll.u32 %s166_s27, 4  ;;  %s171_s30 = sshll.u32 %s170_s6, 4  ;;  %s174_s26 = int_to_ptr.vmem [resolvable:$true] %s173_s26  ;;  %s172_s30 = int_to_ptr.hbm [resolvable:$true] %s171_s30 }
  0x1f   : > { %p472_p4 = pnand %p479_p1, %p819_p3  ;;  %s163_s24 = scalar_lea.sflag [#allocation4], %s162_s11 }
  0x20   : > { %s731_s25 = smov 512   ;;  %s732_s20 = smov 128  }
  0x21   : > { %s733_s8 = smov 8   ;;  %p452_p5 = scmp.ge.s32.totalorder %s729_s22, 1 }
  0x22   : > { %474 = dma.hbm_to_vmem [thread:$0]  (!%p472_p4), %s172_s30, 512, %s174_s26, %s163_s24, %s731_s25, %s732_s20, %s733_s8  }
  0x23   : > { %p188_p6 = scmp.lt.s32.totalorder %s729_s22, 9 }
  0x25   : > { %p189_p8 = pnand %p452_p5, %p188_p6 }
  0x26   : > { %s194_s29 = sand.u32 (!%p189_p8), 1, %s705_s16  }
  0x27   : > { %192 = sbr.rel (%p189_p8) target bundleno = 241 (0xf1), region = 32  ;;  %s453_s23 = sshll.u32 (!%p189_p8), %s194_s29, 5 }
  0x28   : > { %s195_s15 = scalar_lea.sflag (!%p189_p8), [#allocation4], %s194_s29  ;;  %s864_s5 = scalar_lea.vmem (!%p189_p8), [#allocation3], %s453_s23 }
  0x2c   : > { %680 = dma.done.wait (%p829_p7), %s195_s15, 512  }
  0x2d   : > { %682 = vsyncadd (%p829_p7), %s195_s15, 4294966784  ;;  %s227_s20 = sand.u32 1, %s693_s13   ;;  %p230_p3 = scmp.lt.s32.totalorder %s713_s18, 1 }
  0x2e   : > { %s874_s25 = sshll.u32 %s227_s20, 3  ;;  %p457_p7 = scmp.ne.s32.totalorder %s713_s18, 0 }
  0x2f   : > { %s231_s26 = scalar_select %p230_p3, %s713_s18, 1 }
  0x30   : > { %s229_s24 = scalar_lea.vmem [#allocation6], %s874_s25  ;;  %241 = sbr.rel (%p457_p7) target bundleno = 95 (0x5f), region = 40 }
  0x31   : > { %s455_s28 = sshll.u32 %s231_s26, 3 }
  0x32   : > { %s880_s6 = scalar_lea.vmem %s958_s0, %s455_s28  ;;  %s885_s30 = scalar_lea.vmem %s960_s2, %s455_s28 }
  0x35   : > { %v242_v0 = vld [vmem:[%s864_s5] sm:$0xff]  ;;  %v243_v1 = vld [vmem:[%s864_s5 + $0x8] sm:$0xff]  ;;  %v244_v2 = vld [vmem:[%s864_s5 + $0x10] sm:$0xff] }
  0x36   : > { %v245_v3 = vld [vmem:[%s864_s5 + $0x18] sm:$0xff]  ;;  %v246_v4 = vmul.f32 %v242_v0, %v242_v0  ;;  %v247_v5 = vmul.f32 %v243_v1, %v243_v1  ;;  %v248_v6 = vmul.f32 %v244_v2, %v244_v2 }
  0x37   : > { %v249_v7 = vmul.f32 %v245_v3, %v245_v3 }
  0x38   : > { %v250_v8 = vadd.f32 %v247_v5, %v246_v4 }
  0x3a   : > { %v251_v9 = vadd.f32 %v250_v8, %v248_v6 }
  0x3c   : > { %v252_v10 = vadd.f32 %v251_v9, %v249_v7 }
  0x3e   : > { %v253_v11 = vrot.slane %v252_v10, 4 }
  0x40   : > { %v254_v12 = vadd.f32 %v253_v11, %v252_v10 }
  0x42   : > { %v255_v13 = vrot.slane %v254_v12, 2 }
  0x44   : > { %v256_v14 = vadd.f32 %v255_v13, %v254_v12 }
  0x46   : > { %v257_v15 = vrot.slane %v256_v14, 1 }
  0x48   : > { %v258_v16 = vadd.f32 %v257_v15, %v256_v14 }
  0x4a   : > { %v259_v17 = vmax.f32 %v258_v16, 1e-12 }
  0x4c   : > { %573 = vrsqrt.f32 %v259_v17  ;;  %vm266_vm0 = vweird.f32 %v259_v17 }
  0x52   : > { %v574_v18 = vpop.eup %573 }
  0x53   : > { %v261_v19 = vmul.f32 %v574_v18, %v259_v17  ;;  %vm267_vm1 = vweird.f32 %v574_v18 }
  0x54   : > { %vm268_vm2 = vmor %vm266_vm0, %vm267_vm1 }
  0x55   : > { %v262_v20 = vmul.f32 %v574_v18, %v261_v19 }
  0x57   : > { %v263_v21 = vmul.f32 0.5, %v262_v20 }
  0x59   : > { %v264_v22 = vsub.f32 1.5, %v263_v21 }
  0x5b   : > { %v265_v23 = vmul.f32 %v574_v18, %v264_v22 }
  0x5d   : > { %v269_v24 = vsel %vm268_vm2, %v574_v18, %v265_v23 }
  0x5e   : > { %270 = vst [vmem:[#allocation2] sm:$0x1] %v269_v24 }
  0x5f PF: > { %v275_v25 = vld [vmem:[%s864_s5 + $0x18] sm:$0xff]  ;;  %v274_v26 = vld [vmem:[%s864_s5 + $0x10] sm:$0xff]  ;;  %v734_v27 = vmov 0   ;;  %v273_v29 = vld [vmem:[%s864_s5 + $0x8] sm:$0xff]  ;;  %vm276_vm3 = vcmask 261120   ;;  %s463_s29 = sshll.u32 %s713_s18, 2  ;;  %v307_v32 = vlaneseq }
  0x60   : > { %292 = vmatpush.msra.mxu0 %v275_v25  ;;  %575 = vset.pattern.permute.xlu0 %v734_v27  ;;  %v312_v28 = vld [vmem:[%s885_s30] sm:$0xff]  ;;  %s460_s23 = sshll.u32 %s717_s19, 7  ;;  %s332_s15 = sadd.s32 %s717_s19, %s463_s29 }
  0x61   : > { %314 = vperm.xlu0 %575, %v312_v28   ;;  %v272_v30 = vld [vmem:[%s864_s5] sm:$0xff]  ;;  %v308_v34 = vand.u32 127, %v307_v32  ;;  %v310_v35 = vstv %s460_s23  ;;  %s464_s26 = sshll.u32 %s332_s15, 3  ;;  %s336_s18 = sshll.u32 %s229_s24, 4  ;;  %s337_s18 = int_to_ptr.vmem [resolvable:$true] %s336_s18 }
  0x62   : > { %293 = vmatpush.msra.mxu0 %v274_v26  ;;  %v271_v31 = vld [vmem:[%s880_s6] sm:$0xff]  ;;  %s334_s8 = scalar_lea.hbm %s961_s3, %s464_s26  ;;  %s322_s11 = scalar_lea.sflag [#allocation5], %s227_s20 }
  0x63   : > { %v311_v38 = vadd.s32 %v310_v35, %v308_v34  ;;  %s338_s19 = sshll.u32 %s334_s8, 4  ;;  %s627_s29 = scalar_lea.hbm %s961_s3, 64  ;;  %s339_s19 = int_to_ptr.hbm [resolvable:$true] %s338_s19 }
  0x64   : > { %294 = vmatpush.msra.mxu0 %v273_v29  ;;  %s621_s6 = sshra.s32 %s339_s19, 4  ;;  %s622_s6 = int_to_ptr.hbm [resolvable:$true] %s621_s6 }
  0x65   : > { %v576_v33 = vld [vmem:[#allocation2] ss:$0 sm:$0xff]  ;;  %s623_s27 = scalar_lea.hbm %s622_s6, 8  ;;  %p628_p13 = scmp.lt.s32.totalorder %s622_s6, %s961_s3 }
  0x66   : > { %295 = vmatpush.msra.mxu0 %v272_v30  ;;  %p624_p9 = scmp.ne.s32.totalorder %s622_s6, %s623_s27  ;;  %p629_p0 = scmp.lt.s32.totalorder %s627_s29, %s623_s27 }
  0x67   : > { %458 = vmatmul.msk.f32.vlgmr.msra.gmra.mxu0 %vm276_vm3, %v271_v31 }
  0x68   : > { %p625_p10 = pnand %p624_p9, %p837_p12  ;;  %p630_p1 = por %p629_p0, %p628_p13 }
  0x6a   : > { %p626_p11 = pneg %p625_p10 }
  0x6c   : > { %p631_p4 = pnand %p630_p1, %p626_p11 }
  0xd3   : > { %v315_v40 = vpop.permute.xlu0 %314 }
  0xd4   : > { %vm316_vm4 = vcmp.eq.s32.totalorder %v311_v38, %v315_v40 }
  0xe4   : > { %v297_v36 = vpop.f32.mrf.mxu0 }
  0xe5   : > { %v304_v37 = vmul.f32 %v576_v33, %v297_v36 }
  0xe7   : > { %v459_v39 = vclamps-f32 %v304_v37, 1.0 }
  0xe9   : > { %v317_v41 = vmul.f32 30.0, %v459_v39 }
  0xeb   : > { %v461_v42 = vadd.f32 -10.5, %v317_v41 }
  0xed   : > { %v319_v43 = vsel %vm316_vm4, %v461_v42, %v317_v41 }
  0xee   : > { %320 = vst [vmem:[%s229_s24] sm:$0xff] %v319_v43 }
  0xef   : > { %634 = shalt.err (!%p631_p4)
}
  0xf0   : > { %469 = dma.vmem_to_hbm [thread:$0]  (%p837_p12), %s337_s18, 128, %s339_s19, %s322_s11  }
  0xf1 PF: > { %p480_p5 = scmp.ge.s32.totalorder %s729_s22, 2  ;;  %s350_s20 = sand.u32 1, %s689_s12  }
  0xf2   : > { %s351_s25 = scalar_lea.sflag [#allocation5], %s350_s20 }
  0xf3   : > { %p476_p6 = pnand %p480_p5, %p850_p2 }
  0xf5   : > { %p477_p8 = pneg %p476_p6 }
  0xf7   : > { %684 = dma.done.wait (%p477_p8), %s351_s25, 128  }
  0xf8   : > { %686 = vsyncadd (%p477_p8), %s351_s25, 4294967168  ;;  %s19_s22 = sadd.s32 1, %s729_s22   ;;  %s973_s7 = sld [smem:[#allocation12_spill]] }
  0xf9   : > { %p16_p3 = scmp.ge.s32.totalorder %s19_s22, 10   ;;  %s974_s18 = sld [smem:[#allocation9_spill]] }
  0xfa   : > { %s975_s20 = sld [smem:[#allocation10_spill]]  ;;  %s977_s12 = smov %s693_s13 }
  0xfb   : > { %s976_s24 = sld [smem:[#allocation11_spill]]  ;;  %s978_s13 = smov %s697_s14 }
  0xfc   : > { %s979_s14 = smov %s845_s9  ;;  %s980_s15 = smov %s705_s16 }
  0xfd   : > { %s981_s16 = smov %s709_s17  ;;  %s983_s19 = smov %s725_s21 }
  0xfe   : > { %s982_s17 = smov %s973_s7  ;;  %18 = sbr.rel (!%p16_p3) target bundleno = 9 (0x9), region = 87 }
 0x101   : > { %s984_s21 = smov %s976_s24 }
 0x103   :  { %357 = vsyncpa [#allocation4], 1 }
 0x104   :  { %359 = vsyncpa [#allocation4 + $0x1], 1 }
 0x105   :  { %360 = vsyncpa [#allocation5], 1 }
 0x106   :  { %362 = vsyncpa [#allocation5 + $0x1], 1 }

</bundles_post_ra>
